<compile_context>
chip_gen: v6e
topology: v6e:2x2x1
jax: 0.10.0
libtpu: 0.0.40
codegen_flags: <defaults>
</compile_context>

<pallas_src>
import functools

import jax
import jax.numpy as jnp
from jax.experimental import pallas as pl
from jax.experimental.pallas import tpu as pltpu


# ---------------------------------------------------------------------------
# Pallas kernel
# ---------------------------------------------------------------------------
def _attention_gate_kernel(a_ref, w_ref, b_ref, wp_ref, bp_ref, out_ref, *,
                           cin, compute_dtype):
  # a: (CA, TM) rows = [x_r, x_i, g_r, g_i]; lane axis = spatial M.
  a = a_ref[0]

  # One fused block-complex matmul for BOTH 1x1 convs (W_g and W_x), folded
  # bias, then split (CReLU) activation.  s = [s_r ; s_i]  (2*Cint, TM), f32.
  s = jnp.dot(w_ref[...], a, preferred_element_type=jnp.float32)
  s = jnp.maximum(s + b_ref[...], 0.0)

  # psi 1x1 conv (real+imag output channels) as ONE tiny MXU dot:
  #   row 0 of wp = [wp_r^T, -wp_i^T]  -> pre-sigmoid real channel
  #   row 1 of wp = [wp_i^T,  wp_r^T]  -> pre-sigmoid imag channel
  z = jnp.dot(wp_ref[...], s.astype(compute_dtype),
              preferred_element_type=jnp.float32) + bp_ref[...]     # (2, TM)

  # Split sigmoid, kept on the EUP: exp + approximate reciprocal.
  p = pl.reciprocal(1.0 + jnp.exp(-z), approx=True)
  p_r = p[0:1, :]
  p_i = p[1:2, :]

  # Complex gate: out = x * psi (psi broadcast over channels).  Build the full
  # (2*Cin, TM) slab and write it with a single unmasked store.
  x_r = a[:cin, :].astype(jnp.float32)
  x_i = a[cin:2 * cin, :].astype(jnp.float32)
  out = jnp.concatenate([x_r * p_r - x_i * p_i,
                         x_r * p_i + x_i * p_r], axis=0)
  out_ref[0] = out.astype(out_ref.dtype)


# ---------------------------------------------------------------------------
# Wrapper
# ---------------------------------------------------------------------------
@functools.partial(jax.jit, static_argnames=("tm", "compute_dtype"))
def attention_gate_pallas(x, g, params, *, tm=8192, compute_dtype=jnp.bfloat16):
  """x: complex64 (N, Cin, H, W); g: complex64 (N, Cg, H, W)."""
  N, Cin, H, W = x.shape
  _, Cg, _, _ = g.shape
  Cint = params["wg_r"].shape[1]
  HW = H * W
  CA = 2 * (Cin + Cg)

  # --- lane-tile selection -------------------------------------------------
  # Align the spatial axis to 128 lanes; pick the largest 128-multiple that
  # divides the aligned extent and is <= tm (no extra padding beyond the
  # 128-alignment).  Then split further if needed so v7x's two TensorCores
  # both get at least one grid step.
  hw_pad = pl.cdiv(HW, 128) * 128
  q = hw_pad // 128
  best = 1
  for d in range(1, q + 1):
    if q % d == 0 and d * 128 <= max(tm, 128):
      best = d
  block_m = best * 128
  while N * (hw_pad // block_m) < 2 and block_m >= 256:
    block_m //= 2
  n_tiles = hw_pad // block_m

  # --- pack activations NCHW-native (one fused pass: strided real/imag read +
  # concat + bf16 cast).  Pad the lane axis only when HW is not 128-aligned.
  a = jnp.concatenate([x.real, x.imag, g.real, g.imag], axis=1)
  a = a.reshape(N, CA, HW).astype(compute_dtype)
  if hw_pad != HW:
    a = jnp.pad(a, ((0, 0), (0, 0), (0, hw_pad - HW)))

  # --- pack weights into block-complex matrices (once, outside the kernel) --
  f32 = jnp.float32
  wxr = params["wx_r"].astype(f32).T   # (Cint, Cin)
  wxi = params["wx_i"].astype(f32).T
  wgr = params["wg_r"].astype(f32).T   # (Cint, Cg)
  wgi = params["wg_i"].astype(f32).T
  w_block = jnp.concatenate(
      [jnp.concatenate([wxr, -wxi, wgr, -wgi], axis=1),
       jnp.concatenate([wxi,  wxr, wgi,  wgr], axis=1)],
      axis=0).astype(compute_dtype)                       # (2*Cint, CA)
  b_block = jnp.concatenate(
      [(params["bx_r"] + params["bg_r"]).astype(f32).T,   # bias pre-folded
       (params["bx_i"] + params["bg_i"]).astype(f32).T],
      axis=0)                                             # (2*Cint, 1)
  wpr_t = params["wp_r"].astype(f32).T                    # (1, Cint)
  wpi_t = params["wp_i"].astype(f32).T
  wp_block = jnp.concatenate(
      [jnp.concatenate([wpr_t, -wpi_t], axis=1),
       jnp.concatenate([wpi_t,  wpr_t], axis=1)],
      axis=0).astype(compute_dtype)                       # (2, 2*Cint)
  bp = jnp.concatenate(
      [params["bp_r"].astype(f32), params["bp_i"].astype(f32)], axis=0)  # (2,1)

  grid = (N, n_tiles)
  act_spec = pl.BlockSpec((1, CA, block_m), lambda n, j: (n, 0, j))
  out_spec = pl.BlockSpec((1, 2 * Cin, block_m), lambda n, j: (n, 0, j))
  full = lambda r, c: pl.BlockSpec((r, c), lambda n, j: (0, 0))

  out_packed = pl.pallas_call(
      functools.partial(_attention_gate_kernel, cin=Cin,
                        compute_dtype=compute_dtype),
      out_shape=jax.ShapeDtypeStruct((N, 2 * Cin, hw_pad), compute_dtype),
      grid_spec=pltpu.PrefetchScalarGridSpec(
          num_scalar_prefetch=0,
          grid=grid,
          in_specs=[
              act_spec,                 # packed activations
              full(2 * Cint, CA),       # block-complex conv weight
              full(2 * Cint, 1),        # folded conv bias
              full(2, 2 * Cint),        # block-complex psi weight
              full(2, 1),               # psi bias [bp_r; bp_i]
          ],
          out_specs=out_spec,
      ),
      compiler_params=pltpu.CompilerParams(
          dimension_semantics=("parallel", "parallel")),
  )(a, w_block, b_block, wp_block, bp)

  if hw_pad != HW:
    out_packed = out_packed[:, :, :HW]                    # drop spatial pad
  out_r = out_packed[:, :Cin].reshape(N, Cin, H, W).astype(jnp.float32)
  out_i = out_packed[:, Cin:].reshape(N, Cin, H, W).astype(jnp.float32)
  return jax.lax.complex(out_r, out_i)


# ---------------------------------------------------------------------------
# Pure-JAX reference (same math, no Pallas) for verification
# ---------------------------------------------------------------------------
def attention_gate_ref(x, g, params):
  def cconv(t, wr, wi, br, bi):
    w = (wr + 1j * wi).astype(jnp.complex64)          # (Cin, Cout)
    b = (br + 1j * bi).astype(jnp.complex64)          # (1, Cout)
    t_nhwc = jnp.transpose(t, (0, 2, 3, 1))
    y = jnp.einsum("nhwc,cd->nhwd", t_nhwc, w) + b[0]
    return jnp.transpose(y, (0, 3, 1, 2))

  g1 = cconv(g, params["wg_r"], params["wg_i"], params["bg_r"], params["bg_i"])
  x1 = cconv(x, params["wx_r"], params["wx_i"], params["bx_r"], params["bx_i"])
  s = g1 + x1
  s = jnp.maximum(s.real, 0.0) + 1j * jnp.maximum(s.imag, 0.0)
  p = cconv(s, params["wp_r"], params["wp_i"], params["bp_r"], params["bp_i"])
  p = jax.nn.sigmoid(p.real) + 1j * jax.nn.sigmoid(p.imag)
  out_real = x.real * p.real - x.imag * p.imag
  out_imag = x.real * p.imag + x.imag * p.real
  return out_real + 1j * out_imag


# ---------------------------------------------------------------------------
# Main
# ---------------------------------------------------------------------------
if __name__ == "__main__":
  N, H, W = 2, 16, 16
  in_channels, gating_channels, inter_channels = 4, 8, 8

  key = jax.random.PRNGKey(0)
  keys = jax.random.split(key, 16)

  def nrm(k, shape, scale=0.1):
    return (scale * jax.random.normal(k, shape)).astype(jnp.float32)

  # Deterministic synthetic parameters (1x1 conv weights stored as (Cin, Cout)).
  params = dict(
      wg_r=nrm(keys[0], (gating_channels, inter_channels)),
      wg_i=nrm(keys[1], (gating_channels, inter_channels)),
      bg_r=nrm(keys[2], (1, inter_channels)),
      bg_i=nrm(keys[3], (1, inter_channels)),
      wx_r=nrm(keys[4], (in_channels, inter_channels)),
      wx_i=nrm(keys[5], (in_channels, inter_channels)),
      bx_r=nrm(keys[6], (1, inter_channels)),
      bx_i=nrm(keys[7], (1, inter_channels)),
      wp_r=nrm(keys[8], (inter_channels, 1)),
      wp_i=nrm(keys[9], (inter_channels, 1)),
      bp_r=nrm(keys[10], (1, 1)),
      bp_i=nrm(keys[11], (1, 1)),
  )

  x = (jax.random.normal(keys[12], (N, in_channels, H, W))
       + 1j * jax.random.normal(keys[13], (N, in_channels, H, W))
       ).astype(jnp.complex64)
  g = (jax.random.normal(keys[14], (N, gating_channels, H, W))
       + 1j * jax.random.normal(keys[15], (N, gating_channels, H, W))
       ).astype(jnp.complex64)

  out = attention_gate_pallas(x, g, params)
  out = jax.block_until_ready(out)

  ref = attention_gate_ref(x, g, params)
  assert out.shape == (N, in_channels, H, W)
  # bf16 activations + bf16 output on the pallas path -> looser tolerance vs
  # the f32 reference.
  assert jnp.allclose(out.real, ref.real, atol=5e-2, rtol=5e-2)
  assert jnp.allclose(out.imag, ref.imag, atol=5e-2, rtol=5e-2)

  print("KERNEL_OK")
</pallas_src>

<mosaic_0001>
module attributes {stable_mosaic.version = 11 : i64} {
  func.func @_attention_gate_kernel(%arg0: i32, %arg1: i32, %arg2: memref<1x24x256xbf16, #tpu.memory_space<vmem>>, %arg3: memref<16x24xbf16, #tpu.memory_space<vmem>>, %arg4: memref<16x1xf32, #tpu.memory_space<vmem>>, %arg5: memref<2x16xbf16, #tpu.memory_space<vmem>>, %arg6: memref<2x1xf32, #tpu.memory_space<vmem>>, %arg7: memref<1x8x256xbf16, #tpu.memory_space<vmem>>) attributes {dimension_semantics = [#tpu.dimension_semantics<parallel>, #tpu.dimension_semantics<parallel>], iteration_bounds = array<i64: 2, 1>, scalar_prefetch = 0 : i64, scratch_operands = 0 : i64, tpu.core_type = #tpu.core_type<tc>, window_params = [{transform_indices = @transform_0, window_bounds = array<i64: 1, 24, 256>}, {pipeline_mode = #tpu.pipeline_mode<synchronous>, transform_indices = @transform_1, window_bounds = array<i64: 16, 24>}, {pipeline_mode = #tpu.pipeline_mode<synchronous>, transform_indices = @transform_2, window_bounds = array<i64: 16, 1>}, {pipeline_mode = #tpu.pipeline_mode<synchronous>, transform_indices = @transform_3, window_bounds = array<i64: 2, 16>}, {pipeline_mode = #tpu.pipeline_mode<synchronous>, transform_indices = @transform_4, window_bounds = array<i64: 2, 1>}, {transform_indices = @transform_5, window_bounds = array<i64: 1, 8, 256>}]} {
    %c0 = arith.constant 0 : index
    %c0_0 = arith.constant 0 : index
    %c0_1 = arith.constant 0 : index
    %0 = vector.load %arg2[%c0, %c0_0, %c0_1] : memref<1x24x256xbf16, #tpu.memory_space<vmem>>, vector<1x24x256xbf16>
    %1 = vector.shape_cast %0 : vector<1x24x256xbf16> to vector<24x256xbf16>
    %c0_2 = arith.constant 0 : index
    %c0_3 = arith.constant 0 : index
    %2 = vector.load %arg3[%c0_2, %c0_3] : memref<16x24xbf16, #tpu.memory_space<vmem>>, vector<16x24xbf16>
    %cst = arith.constant dense<0.000000e+00> : vector<16x256xf32>
    %3 = tpu.matmul %2, %1, %cst {dimension_numbers = #tpu.dot_dimension_numbers<[1], [0], [0], [1], [0, 0, 1, 1], [], []>} : vector<16x24xbf16>, vector<24x256xbf16>, vector<16x256xf32> -> vector<16x256xf32>
    %c0_4 = arith.constant 0 : index
    %c0_5 = arith.constant 0 : index
    %4 = vector.load %arg4[%c0_4, %c0_5] : memref<16x1xf32, #tpu.memory_space<vmem>>, vector<16x1xf32>
    %5 = vector.broadcast %4 : vector<16x1xf32> to vector<16x256xf32>
    %6 = arith.addf %3, %5 : vector<16x256xf32>
    %cst_6 = arith.constant 0.000000e+00 : f32
    %7 = vector.broadcast %cst_6 : f32 to vector<16x256xf32>
    %8 = arith.maximumf %6, %7 : vector<16x256xf32>
    %c0_7 = arith.constant 0 : index
    %c0_8 = arith.constant 0 : index
    %9 = vector.load %arg5[%c0_7, %c0_8] : memref<2x16xbf16, #tpu.memory_space<vmem>>, vector<2x16xbf16>
    %10 = arith.truncf %8 : vector<16x256xf32> to vector<16x256xbf16>
    %cst_9 = arith.constant dense<0.000000e+00> : vector<2x256xf32>
    %11 = tpu.matmul %9, %10, %cst_9 {dimension_numbers = #tpu.dot_dimension_numbers<[1], [0], [0], [1], [0, 0, 1, 1], [], []>} : vector<2x16xbf16>, vector<16x256xbf16>, vector<2x256xf32> -> vector<2x256xf32>
    %c0_10 = arith.constant 0 : index
    %c0_11 = arith.constant 0 : index
    %12 = vector.load %arg6[%c0_10, %c0_11] : memref<2x1xf32, #tpu.memory_space<vmem>>, vector<2x1xf32>
    %13 = vector.broadcast %12 : vector<2x1xf32> to vector<2x256xf32>
    %14 = arith.addf %11, %13 : vector<2x256xf32>
    %cst_12 = arith.constant 0.000000e+00 : f32
    %15 = vector.broadcast %cst_12 : f32 to vector<2x256xf32>
    %16 = arith.subf %15, %14 : vector<2x256xf32>
    %17 = math.exp %16 : vector<2x256xf32>
    %cst_13 = arith.constant 1.000000e+00 : f32
    %18 = vector.broadcast %cst_13 : f32 to vector<2x256xf32>
    %19 = arith.addf %18, %17 : vector<2x256xf32>
    %20 = tpu.reciprocal %19 {approx = true} : vector<2x256xf32> -> vector<2x256xf32>
    %21 = vector.extract_strided_slice %20 {offsets = [0, 0], sizes = [1, 256], strides = [1, 1]} : vector<2x256xf32> to vector<1x256xf32>
    %22 = vector.extract_strided_slice %20 {offsets = [1, 0], sizes = [1, 256], strides = [1, 1]} : vector<2x256xf32> to vector<1x256xf32>
    %23 = vector.extract_strided_slice %1 {offsets = [0, 0], sizes = [4, 256], strides = [1, 1]} : vector<24x256xbf16> to vector<4x256xbf16>
    %24 = arith.extf %23 : vector<4x256xbf16> to vector<4x256xf32>
    %25 = vector.extract_strided_slice %1 {offsets = [4, 0], sizes = [4, 256], strides = [1, 1]} : vector<24x256xbf16> to vector<4x256xbf16>
    %26 = arith.extf %25 : vector<4x256xbf16> to vector<4x256xf32>
    %27 = vector.broadcast %21 : vector<1x256xf32> to vector<4x256xf32>
    %28 = arith.mulf %24, %27 : vector<4x256xf32>
    %29 = vector.broadcast %22 : vector<1x256xf32> to vector<4x256xf32>
    %30 = arith.mulf %26, %29 : vector<4x256xf32>
    %31 = arith.subf %28, %30 : vector<4x256xf32>
    %32 = vector.broadcast %22 : vector<1x256xf32> to vector<4x256xf32>
    %33 = arith.mulf %24, %32 : vector<4x256xf32>
    %34 = vector.broadcast %21 : vector<1x256xf32> to vector<4x256xf32>
    %35 = arith.mulf %26, %34 : vector<4x256xf32>
    %36 = arith.addf %33, %35 : vector<4x256xf32>
    %37 = tpu.concatenate %31, %36 in 0 : vector<4x256xf32>, vector<4x256xf32> -> vector<8x256xf32>
    %38 = arith.truncf %37 : vector<8x256xf32> to vector<8x256xbf16>
    %c0_14 = arith.constant 0 : index
    %c0_15 = arith.constant 0 : index
    %c0_16 = arith.constant 0 : index
    %39 = vector.load %arg7[%c0_14, %c0_15, %c0_16] : memref<1x8x256xbf16, #tpu.memory_space<vmem>>, vector<1x8x256xbf16>
    %40 = vector.shape_cast %39 : vector<1x8x256xbf16> to vector<8x256xbf16>
    %41 = vector.shape_cast %38 : vector<8x256xbf16> to vector<1x8x256xbf16>
    tpu.vector_store %arg7[%c0_14, %c0_15, %c0_16], %41 {strides = array<i32>} : memref<1x8x256xbf16, #tpu.memory_space<vmem>>, vector<1x8x256xbf16>,
    return
  }
  func.func @transform_0(%arg0: i32, %arg1: i32) -> (i32, i32, i32) {
    %c0_i32 = arith.constant 0 : i32
    %c0_i32_0 = arith.constant 0 : i32
    return %arg0, %c0_i32, %arg1 : i32, i32, i32
  }
  func.func @transform_1(%arg0: i32, %arg1: i32) -> (i32, i32) {
    %c0_i32 = arith.constant 0 : i32
    %c0_i32_0 = arith.constant 0 : i32
    %c0_i32_1 = arith.constant 0 : i32
    return %c0_i32, %c0_i32_0 : i32, i32
  }
  func.func @transform_2(%arg0: i32, %arg1: i32) -> (i32, i32) {
    %c0_i32 = arith.constant 0 : i32
    %c0_i32_0 = arith.constant 0 : i32
    %c0_i32_1 = arith.constant 0 : i32
    return %c0_i32, %c0_i32_0 : i32, i32
  }
  func.func @transform_3(%arg0: i32, %arg1: i32) -> (i32, i32) {
    %c0_i32 = arith.constant 0 : i32
    %c0_i32_0 = arith.constant 0 : i32
    %c0_i32_1 = arith.constant 0 : i32
    return %c0_i32, %c0_i32_0 : i32, i32
  }
  func.func @transform_4(%arg0: i32, %arg1: i32) -> (i32, i32) {
    %c0_i32 = arith.constant 0 : i32
    %c0_i32_0 = arith.constant 0 : i32
    %c0_i32_1 = arith.constant 0 : i32
    return %c0_i32, %c0_i32_0 : i32, i32
  }
  func.func @transform_5(%arg0: i32, %arg1: i32) -> (i32, i32, i32) {
    %c0_i32 = arith.constant 0 : i32
    %c0_i32_0 = arith.constant 0 : i32
    return %arg0, %c0_i32, %arg1 : i32, i32, i32
  }
}

</mosaic_0001>

<bundles_post_ra>
// kernel: custom-call.2
= control target key start
LH: loop header
LB: loop body
LE: loop exit
PB: predicated region body
PF: predicated region fallthrough
CT: control target
= control target key end

     0   :  { %2 = vsyncpa [#allocation0], 0  ;;  %s47_s0 = inlined_call_operand.hbm [shape: c64[2,8,16,16], index: 0, kind: input, shape index: {}]   ;;  %s48_s1 = inlined_call_operand.vmem [shape: f32[2,8,16,16], index: 1, kind: output, shape index: {}]  }
   0x1   :  { %s3_s8 = sshll.u32 %s48_s1, 4  ;;  %s4_s8 = int_to_ptr.vmem [resolvable:$true] %s3_s8 }
   0x2   :  { %s17_s9 = scalar_lea.vmem %s4_s8, 4096  ;;  %p22_p1 = scmp.lt.s32.totalorder %s4_s8, %s4_s8 }
   0x3   :  { %p18_p0 = scmp.ne.s32.totalorder %s4_s8, %s17_s9  ;;  %p23_p2 = scmp.lt.s32.totalorder %s17_s9, %s17_s9 }
   0x5   :  { %p24_p3 = por %p23_p2, %p22_p1 }
   0x7   :  { %p25_p4 = pnand %p24_p3, %p18_p0 }
   0x9   :  { %28 = shalt.err (!%p25_p4)  }
   0xa   :  { %6 = dma.hbm_to_vmem [thread:$0]  %s47_s0, 4096, %s4_s8, [#allocation0] }
   0xb   :  { %29 = dma.done.wait [#allocation0], 4096  }
   0xc   :  { %30 = vsyncadd [#allocation0], 4294963200 }
   0xd   :  { %8 = vsyncpa [#allocation0], 1 }

// kernel: custom-call.1
= control target key start
LH: loop header
LB: loop body
LE: loop exit
PB: predicated region body
PF: predicated region fallthrough
CT: control target
= control target key end

     0   :  { %s51_s0 = inlined_call_operand.hbm [shape: c64[2,4,16,16], index: 0, kind: input, shape index: {}]   ;;  %s52_s1 = inlined_call_operand.vmem [shape: f32[2,4,16,16], index: 1, kind: output, shape index: {}]  }
   0x1   :  { %s2_s8 = scalar_lea.hbm %s51_s0, 2048 }
   0x2   :  { %3 = vsyncpa [#allocation0], 0  ;;  %s4_s11 = sshll.u32 %s52_s1, 4  ;;  %s5_s11 = int_to_ptr.vmem [resolvable:$true] %s4_s11 }
   0x3   :  { %s20_s12 = scalar_lea.vmem %s5_s11, 2048  ;;  %p25_p1 = scmp.lt.s32.totalorder %s5_s11, %s5_s11 }
   0x4   :  { %p21_p0 = scmp.ne.s32.totalorder %s5_s11, %s20_s12  ;;  %p26_p2 = scmp.lt.s32.totalorder %s20_s12, %s20_s12 }
   0x6   :  { %p27_p3 = por %p26_p2, %p25_p1 }
   0x8   :  { %p28_p4 = pnand %p27_p3, %p21_p0 }
   0xa   :  { %31 = shalt.err (!%p28_p4)  }
   0xb   :  { %7 = dma.hbm_to_vmem [thread:$0]  %s2_s8, 2048, %s5_s11, [#allocation0] }
   0xc   :  { %33 = dma.done.wait [#allocation0], 2048  }
   0xd   :  { %34 = vsyncadd [#allocation0], 4294965248 }
   0xe   :  { %9 = vsyncpa [#allocation0], 1 }

// kernel: custom-call.3
= control target key start
LH: loop header
LB: loop body
LE: loop exit
PB: predicated region body
PF: predicated region fallthrough
CT: control target
= control target key end

     0   :  { %s51_s0 = inlined_call_operand.hbm [shape: c64[2,8,16,16], index: 0, kind: input, shape index: {}]   ;;  %s52_s1 = inlined_call_operand.vmem [shape: f32[2,8,16,16], index: 1, kind: output, shape index: {}]  }
   0x1   :  { %s2_s8 = scalar_lea.hbm %s51_s0, 4096 }
   0x2   :  { %3 = vsyncpa [#allocation0], 0  ;;  %s4_s11 = sshll.u32 %s52_s1, 4  ;;  %s5_s11 = int_to_ptr.vmem [resolvable:$true] %s4_s11 }
   0x3   :  { %s20_s12 = scalar_lea.vmem %s5_s11, 4096  ;;  %p25_p1 = scmp.lt.s32.totalorder %s5_s11, %s5_s11 }
   0x4   :  { %p21_p0 = scmp.ne.s32.totalorder %s5_s11, %s20_s12  ;;  %p26_p2 = scmp.lt.s32.totalorder %s20_s12, %s20_s12 }
   0x6   :  { %p27_p3 = por %p26_p2, %p25_p1 }
   0x8   :  { %p28_p4 = pnand %p27_p3, %p21_p0 }
   0xa   :  { %31 = shalt.err (!%p28_p4)  }
   0xb   :  { %7 = dma.hbm_to_vmem [thread:$0]  %s2_s8, 4096, %s5_s11, [#allocation0] }
   0xc   :  { %33 = dma.done.wait [#allocation0], 4096  }
   0xd   :  { %34 = vsyncadd [#allocation0], 4294963200 }
   0xe   :  { %9 = vsyncpa [#allocation0], 1 }

// kernel: custom-call
= control target key start
LH: loop header
LB: loop body
LE: loop exit
PB: predicated region body
PF: predicated region fallthrough
CT: control target
= control target key end

     0   :  { %2 = vsyncpa [#allocation0], 0  ;;  %s47_s0 = inlined_call_operand.hbm [shape: c64[2,4,16,16], index: 0, kind: input, shape index: {}]   ;;  %s48_s1 = inlined_call_operand.vmem [shape: f32[2,4,16,16], index: 1, kind: output, shape index: {}]  }
   0x1   :  { %s3_s8 = sshll.u32 %s48_s1, 4  ;;  %s4_s8 = int_to_ptr.vmem [resolvable:$true] %s3_s8 }
   0x2   :  { %s17_s9 = scalar_lea.vmem %s4_s8, 2048  ;;  %p22_p1 = scmp.lt.s32.totalorder %s4_s8, %s4_s8 }
   0x3   :  { %p18_p0 = scmp.ne.s32.totalorder %s4_s8, %s17_s9  ;;  %p23_p2 = scmp.lt.s32.totalorder %s17_s9, %s17_s9 }
   0x5   :  { %p24_p3 = por %p23_p2, %p22_p1 }
   0x7   :  { %p25_p4 = pnand %p24_p3, %p18_p0 }
   0x9   :  { %28 = shalt.err (!%p25_p4)  }
   0xa   :  { %6 = dma.hbm_to_vmem [thread:$0]  %s47_s0, 2048, %s4_s8, [#allocation0] }
   0xb   :  { %29 = dma.done.wait [#allocation0], 2048  }
   0xc   :  { %30 = vsyncadd [#allocation0], 4294965248 }
   0xd   :  { %8 = vsyncpa [#allocation0], 1 }

// kernel: custom-call.4
= control target key start
LH: loop header
LB: loop body
LE: loop exit
PB: predicated region body
PF: predicated region fallthrough
CT: control target
= control target key end

     0   :  { %s92_s0 = inlined_call_operand.vmem [shape: f32[2,4,16,16], index: 0, kind: input, shape index: {}]   ;;  %s93_s1 = inlined_call_operand.vmem [shape: f32[2,4,16,16], index: 1, kind: input, shape index: {}]   ;;  %s94_s2 = inlined_call_operand.hbm [shape: c64[2,4,16,16], index: 2, kind: output, shape index: {}]  }
   0x1   :  { %s3_s11 = scalar_lea.hbm %s94_s2, 2048 }
   0x2   :  { %4 = vsyncpa [#allocation0], 0  ;;  %s5_s14 = sshll.u32 %s92_s0, 4  ;;  %s6_s14 = int_to_ptr.vmem [resolvable:$true] %s5_s14 }
   0x3   :  { %s18_s15 = scalar_lea.vmem %s6_s14, 2048  ;;  %p23_p1 = scmp.lt.s32.totalorder %s6_s14, %s6_s14 }
   0x4   :  { %p19_p0 = scmp.ne.s32.totalorder %s6_s14, %s18_s15  ;;  %p24_p2 = scmp.lt.s32.totalorder %s18_s15, %s18_s15 }
   0x6   :  { %p25_p3 = por %p24_p2, %p23_p1 }
   0x8   :  { %p26_p4 = pnand %p25_p3, %p19_p0 }
   0xa   :  { %29 = shalt.err (!%p26_p4)  }
   0xb   :  { %8 = dma.vmem_to_hbm [thread:$0]  %s6_s14, 2048, %s94_s2, [#allocation0] }
   0xc   :  { %61 = dma.done.wait [#allocation0], 2048  }
   0xd   :  { %62 = vsyncadd [#allocation0], 4294965248 }
   0xe   :  { %10 = vsyncpa [#allocation0], 1 }
   0xf   :  { %11 = vsyncpa [#allocation1], 0  ;;  %s12_s0 = sshll.u32 %s93_s1, 4  ;;  %s13_s0 = int_to_ptr.vmem [resolvable:$true] %s12_s0 }
  0x10   :  { %s38_s20 = scalar_lea.vmem %s13_s0, 2048  ;;  %p43_p6 = scmp.lt.s32.totalorder %s13_s0, %s13_s0 }
  0x11   :  { %p39_p5 = scmp.ne.s32.totalorder %s13_s0, %s38_s20  ;;  %p44_p7 = scmp.lt.s32.totalorder %s38_s20, %s38_s20 }
  0x13   :  { %p45_p8 = por %p44_p7, %p43_p6 }
  0x15   :  { %p46_p9 = pnand %p45_p8, %p39_p5 }
  0x17   :  { %49 = shalt.err (!%p46_p9)  }
  0x18   :  { %15 = dma.vmem_to_hbm [thread:$0]  %s13_s0, 2048, %s3_s11, [#allocation1] }
  0x19   :  { %63 = dma.done.wait [#allocation1], 2048  }
  0x1a   :  { %64 = vsyncadd [#allocation1], 4294965248 }
  0x1b   :  { %17 = vsyncpa [#allocation1], 1 }

// kernel: attention_gate_pallas.1
= control target key start
LH: loop header
LB: loop body
LE: loop exit
PB: predicated region body
PF: predicated region fallthrough
CT: control target
= control target key end

     0   :  { %s683_s18 = smov 0   ;;  %s685_s19 = smov 0   ;;  %s745_s0 = inlined_call_operand.vmem [shape: bf16[2,24,256], index: 0, kind: input, shape index: {}]   ;;  %s746_s1 = inlined_call_operand.vmem [shape: bf16[16,24], index: 1, kind: input, shape index: {}]   ;;  %s747_s2 = inlined_call_operand.vmem [shape: f32[16,1], index: 2, kind: input, shape index: {}]   ;;  %s748_s3 = inlined_call_operand.vmem [shape: bf16[2,16], index: 3, kind: input, shape index: {}]   ;;  %s749_s4 = inlined_call_operand.vmem [shape: f32[2,1], index: 4, kind: input, shape index: {}]   ;;  %s750_s5 = inlined_call_operand.vmem [shape: bf16[2,8,256], index: 5, kind: output, shape index: {}]  }
   0x1   :  { %s687_s20 = smov 0  }
   0x2 LB: > { %s27_s21 = sadd.s32 1, %s646_s19  ;;  %p570_p0 = scmp.ge.s32.totalorder %s650_s20, 1  ;;  %s650_s20 = sphi %s687_s20, %s15_s20   ;;  %s646_s19 = sphi %s685_s19, %s752_s19   ;;  %s642_s18 = sphi %s683_s18, %s751_s18  }
   0x3   : > { %p29_p1 = scmp.ge.s32.totalorder %s27_s21, 2  ;;  %p208_p2 = scmp.lt.s32.totalorder %s650_s20, 3 }
   0x5   : > { %s754_s21 = smov (%p29_p1, %s27_s21), 0  ;;  %p209_p3 = pnand %p570_p0, %p208_p2 }
   0x6   : > { %p245_p4 = scmp.lt.s32.totalorder (!%p209_p3), %s642_s18, 1 }
   0x7   : > { %212 = sbr.rel (%p209_p3) target bundleno = 481 (0x1e1), region = 40 }
   0xc   : > { %v652_v0 = vmov 0   ;;  %v270_v1 = vld [vmem:[%s747_s2] sm:$0xff]  ;;  %s756_s18 = smov (!%p245_p4, %s642_s18), 1  ;;  %v271_v2 = vld [vmem:[%s747_s2 + $0x8] sm:$0xff]  ;;  %vm306_vm0 = vcmask 1043456   ;;  %vm302_vm1 = vcmask 195584   ;;  %v426_v45 = vlaneseq }
   0xd   : > { %345 = vmatprep.mubr.bf16.mxu0 %v652_v0  ;;  %613 = vset.pattern.permute.xlu0 %v652_v0  ;;  %s587_s26 = smul.u32 24, %s756_s18  ;;  %v619_v11 = vld [vmem:[%s746_s1] sm:$0xff]   ;;  %vm369_vm2 = vcmask 130048   ;;  %s585_s11 = sshll.u32 %s756_s18, 3 }
   0xe   : > { %274 = vperm.xlu0 %613, %v270_v1   ;;  %405 = vmatprep.mubr.bf16.mxu1 %v652_v0  ;;  %v363_v12 = vld [vmem:[%s749_s4] sm:$0x3]  ;;  %v427_v46 = vshrl.u32 %v426_v45, 7  ;;  %s262_s14 = scalar_lea.vmem %s750_s5, %s585_s11 }
   0xf   : > { %614 = vset.pattern.permute.xlu1 %v652_v0  ;;  %s252_s29 = scalar_lea.vmem %s745_s0, %s587_s26  ;;  %v360_v29 = vld [vmem:[%s748_s3] sm:$0x1] }
  0x10   : > { %v713_v3 = vld [vmem:[%s252_s29] sm:$0xff]  ;;  %v267_v4 = vld [vmem:[%s252_s29 + $0x10] sm:$0xff]  ;;  %v266_v5 = vld [vmem:[%s252_s29 + $0x8] sm:$0xff]  ;;  %366 = vperm.xlu1 %614, %v363_v12   ;;  %v428_v47 = vsub.s32 0, %v427_v46  ;;  %v438_v48 = vsub.s32 1, %v427_v46 }
  0x11   : > { %v578_v6 = vcombine.high %v267_v4, %v267_v4  ;;  %v577_v7 = vcombine.low %v267_v4, %v267_v4  ;;  %v576_v8 = vcombine.high %v713_v3, %v266_v5  ;;  %v575_v10 = vcombine.low %v713_v3, %v266_v5 }
  0x12   : > { %279 = vperm.xlu0 %613, %v271_v2   ;;  %v424_v49 = vunpack.c.l.bf16 %v713_v3  ;;  %v425_v51 = vunpack.c.h.bf16 %v713_v3 }
  0x13   : > { %579 = vmatprep.subr.msk.bf16.mxu0 %vm306_vm0, %v578_v6  ;;  %v308_v9 = vsel %vm306_vm0, %v577_v7, 0 }
  0x14   : > { %326 = vmatpush1.bf16.msra.mxu0 %v308_v9 }
  0x15   : > { %327 = vmatprep.subr.bf16.mxu0 %v576_v8 }
  0x18   : > { %328 = vmatpush1.bf16.msra.mxu0 %v575_v10 }
  0x1b   : > { %580 = vmatmul.mubr.msk.bf16.vlgmr.msra.gmra.mxu0 %vm302_vm1, %v619_v11 }
  0x89   : > { %v275_v13 = vpop.permute.xlu0 %274 }
  0x8b   : > { %v367_v30 = vpop.permute.xlu1 %366 }
  0x8d   : > { %v280_v16 = vpop.permute.xlu0 %279 }
  0xdb   : > { %v347_v14 = vpop.f32.mrf.mxu0 }
  0xdc   : > { %v348_v20 = vadd.f32 %v347_v14, %v275_v13 }
  0xdd   : > { %v349_v15 = vpop.f32.mrf.mxu0 }
  0xde   : > { %v350_v18 = vadd.f32 %v349_v15, %v275_v13  ;;  %v356_v26 = vmax.f32 %v348_v20, 0.0 }
  0xdf   : > { %v351_v17 = vpop.f32.mrf.mxu0 }
  0xe0   : > { %v352_v19 = vadd.f32 %v351_v17, %v280_v16  ;;  %v357_v24 = vmax.f32 %v350_v18, 0.0 }
  0xe1   : > { %v353_v21 = vpop.f32.mrf.mxu0 }
  0xe2   : > { %v354_v22 = vadd.f32 %v353_v21, %v280_v16  ;;  %v358_v23 = vmax.f32 %v352_v19, 0.0 }
  0xe4   : > { %v359_v25 = vmax.f32 %v354_v22, 0.0  ;;  %v361_v28 = vpack.c.bf16 %v358_v23, %v356_v26 }
  0xe6   : > { %v362_v27 = vpack.c.bf16 %v359_v25, %v357_v24 }
  0xe8   : > { %387 = vmatprep.subr.bf16.mxu1 %v362_v27 }
  0xe9   : > { %388 = vmatpush1.bf16.msra.mxu1 %v361_v28 }
  0xec   : > { %581 = vmatmul.mubr.msk.bf16.vlgmr.msra.gmra.mxu1 %vm369_vm2, %v360_v29 }
 0x1ac   : > { %v407_v31 = vpop.f32.mrf.mxu1 }
 0x1ad   : > { %v408_v32 = vadd.f32 %v407_v31, %v367_v30 }
 0x1ae   : > { %v409_v33 = vpop.f32.mrf.mxu1 }
 0x1af   : > { %v414_v34 = vsub.f32 0.0, %v408_v32  ;;  %v410_v35 = vadd.f32 %v409_v33, %v367_v30 }
 0x1b0   : > { %v411_v36 = vpop.f32.mrf.mxu1 }
 0x1b1   : > { %v416_v37 = vmul.f32 1.442695, %v414_v34  ;;  %v415_v38 = vsub.f32 0.0, %v410_v35 }
 0x1b2   : > { %v412_v39 = vpop.f32.mrf.mxu1 }
 0x1b3   : > { %620 = vpow2.f32 %v416_v37  ;;  %v418_v40 = vmul.f32 1.442695, %v415_v38 }
 0x1b5   : > { %622 = vpow2.f32 %v418_v40 }
 0x1c0   : > { %v621_v41 = vpop.eup %620 }
 0x1c1   : > { %v420_v42 = vadd.f32 1.0, %v621_v41 }
 0x1c2   : > { %v623_v43 = vpop.eup %622 }
 0x1c3   : > { %624 = vrcp.f32 %v420_v42  ;;  %v421_v44 = vadd.f32 1.0, %v623_v43 }
 0x1c5   : > { %626 = vrcp.f32 %v421_v44 }
 0x1d0   : > { %v625_v50 = vpop.eup %624 }
 0x1d1   : > { %v429_v52 = vrot.slane %v625_v50, %v428_v47  ;;  %v439_v53 = vrot.slane %v625_v50, %v438_v48 }
 0x1d2   : > { %v627_v54 = vpop.eup %626 }
 0x1d3   : > { %v434_v55 = vmul.f32 %v429_v52, %v424_v49  ;;  %v444_v56 = vmul.f32 %v439_v53, %v424_v49  ;;  %v433_v57 = vrot.slane %v627_v54, %v428_v47  ;;  %v443_v58 = vrot.slane %v627_v54, %v438_v48 }
 0x1d5   : > { %v456_v59 = vrot.slane %v434_v55, 4  ;;  %v435_v60 = vmul.f32 %v433_v57, %v425_v51  ;;  %v445_v61 = vmul.f32 %v443_v58, %v425_v51  ;;  %v448_v62 = vrot.slane %v444_v56, 4 }
 0x1d7   : > { %v460_v63 = vadd.f32 %v456_v59, %v444_v56  ;;  %v449_v0 = vrot.slane %v445_v61, 4  ;;  %v457_v1 = vrot.slane %v435_v60, 4  ;;  %v452_v5 = vsub.f32 %v434_v55, %v448_v62 }
 0x1d9   : > { %v464_v2 = vrot.slane %v460_v63, 4  ;;  %v461_v4 = vadd.f32 %v457_v1, %v445_v61  ;;  %v453_v3 = vsub.f32 %v435_v60, %v449_v0 }
 0x1db   : > { %v465_v6 = vrot.slane %v461_v4, 4  ;;  %v468_v7 = vsel %vm306_vm0, %v452_v5, %v464_v2 }
 0x1dd   : > { %v469_v8 = vsel %vm306_vm0, %v453_v3, %v465_v6 }
 0x1de   : > { %v586_v9 = vpack.c.bf16 %v469_v8, %v468_v7 }
 0x1e0   : > { %478 = vst [vmem:[%s262_s14] sm:$0xff] %v586_v9 }
 0x1e1 PF: > { %s15_s20 = sadd.s32 1, %s650_s20   ;;  %s751_s18 = smov %s646_s19 }
 0x1e2   : > { %p12_p5 = scmp.ge.s32.totalorder %s15_s20, 4   ;;  %s752_s19 = smov %s754_s21 }
 0x1e4   :  { %14 = sbr.rel (!%p12_p5) target bundleno = 2 (0x2), region = 70 }

</bundles_post_ra>
